<compile_context>
chip_gen: v7x
topology: tpu7x:2x2x1
jax: 0.10.0
libtpu: 0.0.40
codegen_flags: <defaults>
</compile_context>

<pallas_src>
import jax
import jax.numpy as jnp
from jax.experimental import pallas as pl
from jax.experimental.pallas import tpu as pltpu


def _copy_kernel(x_ref, o_ref):
    # Identity copy of one (block_rows, width) tile.
    o_ref[...] = x_ref[...]


_LANE_WIDTHS = (4096, 2048, 1024, 512, 256, 128)


def _sublane_min(dtype):
    """Dtype-aware packed-tile sublane minimum: 8 f32, 16 bf16, 32 int8/fp8."""
    itemsize = jnp.dtype(dtype).itemsize
    return max(8, 32 // max(itemsize, 1))


def _pallas_flat_copy(flat):
    """Materialize a copy of a 1-D contiguous buffer with a Pallas kernel."""
    n = flat.shape[0]
    if n == 0:
        # Short-circuit: avoid an empty grid.
        return flat

    dtype = flat.dtype
    itemsize = jnp.dtype(dtype).itemsize
    sub_min = _sublane_min(dtype)

    # Widest lane dimension (multiple of 128) that divides n exactly, so the
    # 2-D view requires no pad pass and no trailing slice pass.
    width = None
    for w in _LANE_WIDTHS:
        if n % w == 0:
            width = w
            break
    if width is None:
        # Rare fallback: n is not a multiple of 128. Pad to the next multiple
        # of 128 and slice the result (one extra pass over HBM, only here).
        # TODO(synk): replace with a masked 1-D boundary block to avoid the pad.
        padded = ((n + 127) // 128) * 128
        flat_p = jnp.pad(flat, (0, padded - n))
        return _pallas_flat_copy(flat_p)[:n]

    rows = n // width
    x2d = flat.reshape(rows, width)

    # Block sizing: target ~2 MiB per block. With default double buffering of
    # one input and one output there are ~4 live blocks (~8 MiB VMEM), safely
    # under v7x's 32 MiB scoped default and tiny vs. v5e/v6e's 128 MiB, while
    # big enough to amortize the ~0.35 us per-grid-step overhead.
    target_block_bytes = 2 * 1024 * 1024
    block_rows = max(
        sub_min,
        (target_block_bytes // (width * itemsize)) // sub_min * sub_min,
    )
    if block_rows >= rows:
        if rows > sub_min:
            # Prefer >= 2 grid steps so v7x's two TensorCores both stream.
            half = (rows + 1) // 2
            block_rows = max(sub_min, (half // sub_min) * sub_min)
        else:
            # Full row extent in one block (allowed even when < sublane min).
            block_rows = rows

    grid = (pl.cdiv(rows, block_rows),)  # partial boundary block is fine

    out2d = pl.pallas_call(
        _copy_kernel,
        out_shape=jax.ShapeDtypeStruct((rows, width), dtype),
        grid_spec=pltpu.PrefetchScalarGridSpec(
            num_scalar_prefetch=0,
            grid=grid,
            in_specs=[pl.BlockSpec((block_rows, width), lambda i: (i, 0))],
            out_specs=pl.BlockSpec((block_rows, width), lambda i: (i, 0)),
        ),
        compiler_params=pltpu.CompilerParams(
            dimension_semantics=("parallel",),
        ),
    )(x2d)

    return out2d.reshape(n)


def _resolve_size(size, numel):
    """Resolve a torch-style size (with at most one -1) against numel."""
    size = list(size)
    if size.count(-1) > 1:
        raise ValueError("only one dimension can be inferred (-1)")
    known = 1
    for s in size:
        if s != -1:
            known *= int(s)
    if -1 in size:
        if known == 0 or numel % known != 0:
            raise ValueError(
                f"shape {tuple(size)} is invalid for input of size {numel}"
            )
        size[size.index(-1)] = numel // known
    elif known != numel:
        raise ValueError(
            f"shape {tuple(size)} is invalid for input of size {numel}"
        )
    return tuple(size)


class View:
    """JAX/Pallas equivalent of the PyTorch View module.

    Default path is a pure-metadata reshape (what torch .view does on a
    contiguous tensor; zero HBM traffic). Set `materialize_with_pallas=True`
    to force a materialized copy through the optimized Pallas kernel.
    """

    def __init__(self, size, materialize_with_pallas=False):
        self.size = tuple(size) if isinstance(size, (tuple, list)) else (size,)
        self.materialize = materialize_with_pallas

    def __call__(self, tensor):
        new_shape = _resolve_size(self.size, tensor.size)
        if self.materialize:
            copied = _pallas_flat_copy(jnp.ravel(tensor))
            return copied.reshape(new_shape)
        # Row-major reshape of a contiguous array == torch .view semantics;
        # compiles to a no-op/bitcast (no kernel, no memory traffic).
        return jnp.reshape(tensor, new_shape)


if __name__ == "__main__":
    key = jax.random.PRNGKey(0)
    # Small NCHW-like input: (2, 4, 16, 16) -> (2, 1024)
    x = jax.random.normal(key, (2, 4, 16, 16), dtype=jnp.float32)
    ref = x.reshape(-1, 4 * 16 * 16)

    # Primary (zero-copy) path — the review's top optimization: no kernel.
    view = View((-1, 4 * 16 * 16))
    y = view(x)
    jax.block_until_ready(y)
    assert y.shape == (2, 1024), y.shape
    assert y.dtype == x.dtype
    assert jnp.array_equal(y, ref)

    # Pallas materialized-copy path, exercised once (single wide block).
    view_copy = View((-1, 4 * 16 * 16), materialize_with_pallas=True)
    y2 = view_copy(x)
    jax.block_until_ready(y2)
    assert y2.shape == (2, 1024), y2.shape
    assert y2.dtype == x.dtype
    assert jnp.array_equal(y2, ref)

    # Multi-step grid with a partial boundary block (75 rows of 512 lanes),
    # exercising the no-pad / no-slice tiled path.
    x3 = jax.random.normal(jax.random.PRNGKey(0), (5, 15, 512), dtype=jnp.float32)
    view3 = View((75, 512), materialize_with_pallas=True)
    y3 = view3(x3)
    jax.block_until_ready(y3)
    assert jnp.array_equal(y3, x3.reshape(75, 512))

    print("KERNEL_OK")
</pallas_src>

<mosaic_0001>
module attributes {stable_mosaic.version = 11 : i64} {
  func.func @_copy_kernel(%arg0: i32, %arg1: memref<1x2048xf32, #tpu.memory_space<vmem>>, %arg2: memref<1x2048xf32, #tpu.memory_space<vmem>>) attributes {dimension_semantics = [#tpu.dimension_semantics<parallel>], iteration_bounds = array<i64: 1>, scalar_prefetch = 0 : i64, scratch_operands = 0 : i64, tpu.core_type = #tpu.core_type<tc>, window_params = [{transform_indices = @transform_0, window_bounds = array<i64: 1, 2048>}, {transform_indices = @transform_1, window_bounds = array<i64: 1, 2048>}]} {
    %c0 = arith.constant 0 : index
    %c0_0 = arith.constant 0 : index
    %0 = vector.load %arg1[%c0, %c0_0] : memref<1x2048xf32, #tpu.memory_space<vmem>>, vector<1x2048xf32>
    %c0_1 = arith.constant 0 : index
    %c0_2 = arith.constant 0 : index
    %1 = vector.load %arg2[%c0_1, %c0_2] : memref<1x2048xf32, #tpu.memory_space<vmem>>, vector<1x2048xf32>
    tpu.vector_store %arg2[%c0_1, %c0_2], %0 {strides = array<i32>} : memref<1x2048xf32, #tpu.memory_space<vmem>>, vector<1x2048xf32>,
    return
  }
  func.func @transform_0(%arg0: i32) -> (i32, i32) {
    %c0_i32 = arith.constant 0 : i32
    %c0_i32_0 = arith.constant 0 : i32
    return %arg0, %c0_i32 : i32, i32
  }
  func.func @transform_1(%arg0: i32) -> (i32, i32) {
    %c0_i32 = arith.constant 0 : i32
    %c0_i32_0 = arith.constant 0 : i32
    return %arg0, %c0_i32 : i32, i32
  }
}

</mosaic_0001>

<bundles_post_ra>
// kernel: tpu_custom_call.1
= control target key start
LH: loop header
LB: loop body
LE: loop exit
PB: predicated region body
PF: predicated region fallthrough
CT: control target
= control target key end

     0   :  { %6 = vsyncpa [#allocation3], 0  ;;  %s126_s0 = inlined_call_operand.hbm [shape: f32[1,2048], index: 0, kind: input, shape index: {}]   ;;  %s127_s1 = inlined_call_operand.hbm [shape: f32[1,2048], index: 1, kind: output, shape index: {}]  }
   0x1   :  { %7 = vsyncpa [#allocation4], 0  ;;  %s90_s6 = smov [#allocation2]   ;;  %s42_s10 = scalar_lea.hbm %s126_s0, 256 }
   0x2   :  { %s14_s7 = sshll.u32 %s90_s6, 4  ;;  %p43_p0 = scmp.ne.s32.totalorder %s126_s0, %s42_s10  ;;  %s15_s7 = int_to_ptr.vmem [resolvable:$true] %s14_s7 }
   0x3   :  { %p46_p1 = scmp.lt.u32.totalorder %s42_s10, %s126_s0 }
   0x5   :  { %p48_p2 = pnand %p46_p1, %p43_p0 }
   0x7   :  { %51 = shalt.err (!%p48_p2)
}
   0x8   :  { %s52_s15 = scalar_lea.vmem %s15_s7, 256  ;;  %p57_p4 = scmp.lt.s32.totalorder %s15_s7, %s15_s7 }
   0x9   :  { %p53_p3 = scmp.ne.s32.totalorder %s15_s7, %s52_s15  ;;  %p58_p5 = scmp.lt.s32.totalorder %s52_s15, %s52_s15 }
   0xb   :  { %p59_p6 = por %p58_p5, %p57_p4 }
   0xd   :  { %p60_p7 = pnand %p59_p6, %p53_p3 }
   0xf   :  { %63 = shalt.err (!%p60_p7)
}
  0x10   :  { %17 = dma.hbm_to_vmem [thread:$0]  %s126_s0, 256, %s15_s7, [#allocation3]  }
  0x11   :  { %86 = dma.done.wait [#allocation3], 256  }
  0x12   :  { %87 = vsyncadd [#allocation3], 4294967040  ;;  %s91_s18 = smov [#allocation5]   ;;  %v21_v0 = vld [vmem:[#allocation2] sm:$0xff]  ;;  %v22_v1 = vld [vmem:[#allocation2 + $0x8] sm:$0xff] }
  0x13   :  { %s31_s19 = sshll.u32 %s91_s18, 4  ;;  %23 = vst [vmem:[#allocation5] sm:$0xff] %v21_v0  ;;  %24 = vst [vmem:[#allocation5 + $0x8] sm:$0xff] %v22_v1  ;;  %s32_s19 = int_to_ptr.vmem [resolvable:$true] %s31_s19 }
  0x14   :  { %s64_s20 = scalar_lea.vmem %s32_s19, 256  ;;  %p69_p9 = scmp.lt.s32.totalorder %s32_s19, %s32_s19 }
  0x15   :  { %p65_p8 = scmp.ne.s32.totalorder %s32_s19, %s64_s20  ;;  %p70_p10 = scmp.lt.s32.totalorder %s64_s20, %s64_s20 }
  0x17   :  { %p71_p11 = por %p70_p10, %p69_p9 }
  0x19   :  { %p72_p12 = pnand %p71_p11, %p65_p8 }
  0x1b   :  { %75 = shalt.err (!%p72_p12)
}
  0x1c   :  { %s76_s0 = scalar_lea.hbm %s127_s1, 256 }
  0x1d   :  { %p77_p13 = scmp.ne.s32.totalorder %s127_s1, %s76_s0  ;;  %p80_p0 = scmp.lt.u32.totalorder %s76_s0, %s127_s1 }
  0x1f   :  { %p82_p1 = pnand %p80_p0, %p77_p13 }
  0x21   :  { %85 = shalt.err (!%p82_p1)
}
  0x22   :  { %34 = dma.vmem_to_hbm [thread:$0]  %s32_s19, 256, %s127_s1, [#allocation4]  }
  0x23   :  { %88 = dma.done.wait [#allocation4], 256  }
  0x24   :  { %89 = vsyncadd [#allocation4], 4294967040 }
  0x25   :  { %38 = vsyncpa [#allocation3], 1 }
  0x26   :  { %39 = vsyncpa [#allocation4], 1 }

</bundles_post_ra>
